<compile_context>
chip_gen: v5e
topology: v5e:2x2
jax: 0.10.0
libtpu: 0.0.40
codegen_flags: <defaults>
</compile_context>

<pallas_src>
import jax
import jax.numpy as jnp
from jax.experimental import pallas as pl
from jax.experimental.pallas import tpu as pltpu


def mlp_kernel(x_ref, w1_ref, w2_ref, aux_ref, o_ref):
    h1d = w1_ref.shape[1]          # hidden1
    h2d = w2_ref.shape[1]          # hidden2
    outd = o_ref.shape[1]          # output size

    # Packed aux (f32): row0=b1, row1=b2, row2=b3, rows 3:3+h2 = w3 (h2, out)
    b1 = aux_ref[0:1, :h1d]                    # (1, h1)
    b2 = aux_ref[1:2, :h2d]                    # (1, h2)
    b3 = aux_ref[2:3, :outd]                   # (1, out)
    w3 = aux_ref[3:3 + h2d, :outd]             # (h2, out) f32

    # Layer 1: cast x to bf16 in-kernel (cheap VPU op on a (TM,16) tile), single-pass
    # bf16 x bf16 MXU matmul with f32 accumulate; bias + ReLU in f32.
    x_bf16 = x_ref[...].astype(jnp.bfloat16)
    h1 = jnp.dot(x_bf16, w1_ref[...], preferred_element_type=jnp.float32)
    h1 = jnp.maximum(h1 + b1, 0.0)                               # (TM, h1) f32

    # Layer 2: bf16 operands, f32 accumulate (no f32 multi-pass MXU path).
    h2 = jnp.dot(h1.astype(jnp.bfloat16), w2_ref[...],
                 preferred_element_type=jnp.float32)
    h2 = jnp.maximum(h2 + b2, 0.0)                               # (TM, h2) f32

    # Layer 3: plain (TM, h2) @ (h2, out) -> natural (TM, out) store; avoids the
    # implicit h2 transpose the lane-dense (out, TM) formulation required.
    out = jnp.dot(h2.astype(jnp.bfloat16), w3.astype(jnp.bfloat16),
                  preferred_element_type=jnp.float32)
    o_ref[...] = (out + b3).astype(o_ref.dtype)


def _pack_aux(b1, b2, w3, b3):
    """Pack b1, b2, b3 and w3 into one small f32 array of shape (3 + h2, W)."""
    h1 = b1.shape[0]
    h2 = b2.shape[0]
    out = b3.shape[0]
    assert w3.shape == (h2, out), (w3.shape, h2, out)
    width = max(h1, h2, out)
    aux = jnp.zeros((3 + h2, width), jnp.float32)
    aux = aux.at[0, :h1].set(b1.astype(jnp.float32))
    aux = aux.at[1, :h2].set(b2.astype(jnp.float32))
    aux = aux.at[2, :out].set(b3.astype(jnp.float32))
    aux = aux.at[3:3 + h2, :out].set(w3.astype(jnp.float32))
    return aux


def nn2_forward(x, params, block_m=16384):
    """NN2 forward pass.

    x: [batch, input_size] float32
    params: w1 [in,h1], b1 [h1], w2 [h1,h2], b2 [h2], w3 [h2,out], b3 [out]
    returns: [batch, out] float32
    """
    batch, in_size = x.shape
    out_size = params["w3"].shape[1]

    # Weights are tiny & one-time; cast here (folded/constant-folded under jit).
    w1 = params["w1"].astype(jnp.bfloat16)
    w2 = params["w2"].astype(jnp.bfloat16)
    aux = _pack_aux(params["b1"], params["b2"], params["w3"], params["b3"])

    tm = min(block_m, batch)
    grid = (pl.cdiv(batch, tm),)

    out = pl.pallas_call(
        mlp_kernel,
        out_shape=jax.ShapeDtypeStruct((batch, out_size), jnp.float32),
        grid=grid,
        in_specs=[
            pl.BlockSpec((tm, in_size), lambda i: (i, 0)),   # x tiles, pipelined
            pl.BlockSpec(w1.shape, lambda i: (0, 0)),        # resident weights
            pl.BlockSpec(w2.shape, lambda i: (0, 0)),
            pl.BlockSpec(aux.shape, lambda i: (0, 0)),
        ],
        out_specs=pl.BlockSpec((tm, out_size), lambda i: (i, 0)),
        compiler_params=pltpu.CompilerParams(
            dimension_semantics=("parallel",)),
    )(x, w1, w2, aux)

    return out


def init_params(key, input_size, hidden1_size=32, hidden2_size=16, output_size=1):
    """Deterministic synthetic parameters matching NN2's layer shapes."""
    ks = jax.random.split(key, 6)
    scale = 0.1
    return {
        "w1": scale * jax.random.normal(ks[0], (input_size, hidden1_size), jnp.float32),
        "b1": scale * jax.random.normal(ks[1], (hidden1_size,), jnp.float32),
        "w2": scale * jax.random.normal(ks[2], (hidden1_size, hidden2_size), jnp.float32),
        "b2": scale * jax.random.normal(ks[3], (hidden2_size,), jnp.float32),
        "w3": scale * jax.random.normal(ks[4], (hidden2_size, output_size), jnp.float32),
        "b3": scale * jax.random.normal(ks[5], (output_size,), jnp.float32),
    }


def nn2_reference(x, p):
    """Pure-JAX reference using the same bf16-operand / f32-accumulate numerics."""
    h1 = jnp.maximum(
        jnp.dot(x.astype(jnp.bfloat16), p["w1"].astype(jnp.bfloat16),
                preferred_element_type=jnp.float32) + p["b1"], 0.0)
    h2 = jnp.maximum(
        jnp.dot(h1.astype(jnp.bfloat16), p["w2"].astype(jnp.bfloat16),
                preferred_element_type=jnp.float32) + p["b2"], 0.0)
    return jnp.dot(h2.astype(jnp.bfloat16), p["w3"].astype(jnp.bfloat16),
                   preferred_element_type=jnp.float32) + p["b3"]


if __name__ == "__main__":
    key = jax.random.PRNGKey(0)
    k_x, k_x2, k_p = jax.random.split(key, 3)

    batch, input_size = 8, 16
    x = jax.random.normal(k_x, (batch, input_size), jnp.float32)
    params = init_params(k_p, input_size)

    fwd = jax.jit(nn2_forward, static_argnames=("block_m",))

    out = fwd(x, params)
    jax.block_until_ready(out)
    ref = nn2_reference(x, params)
    assert out.shape == (batch, 1)
    assert jnp.allclose(out, ref, atol=1e-2, rtol=1e-2), float(
        jnp.max(jnp.abs(out - ref)))

    # Partial-last-tile check (batch not a multiple of the tile): grid=2, last tile
    # has 4 padded rows whose output writes are masked.
    batch2 = 12
    x2 = jax.random.normal(k_x2, (batch2, input_size), jnp.float32)
    out2 = fwd(x2, params, block_m=8)
    jax.block_until_ready(out2)
    ref2 = nn2_reference(x2, params)
    assert out2.shape == (batch2, 1)
    assert jnp.allclose(out2, ref2, atol=1e-2, rtol=1e-2), float(
        jnp.max(jnp.abs(out2 - ref2)))

    print("KERNEL_OK")
</pallas_src>

<mosaic_0001>
module attributes {stable_mosaic.version = 11 : i64} {
  func.func @mlp_kernel(%arg0: i32, %arg1: memref<8x16xf32, #tpu.memory_space<vmem>>, %arg2: memref<16x32xbf16, #tpu.memory_space<vmem>>, %arg3: memref<32x16xbf16, #tpu.memory_space<vmem>>, %arg4: memref<19x32xf32, #tpu.memory_space<vmem>>, %arg5: memref<8x1xf32, #tpu.memory_space<vmem>>) attributes {dimension_semantics = [#tpu.dimension_semantics<parallel>], iteration_bounds = array<i64: 1>, scalar_prefetch = 0 : i64, scratch_operands = 0 : i64, tpu.core_type = #tpu.core_type<tc>, window_params = [{transform_indices = @transform_0, window_bounds = array<i64: 8, 16>}, {pipeline_mode = #tpu.pipeline_mode<synchronous>, transform_indices = @transform_1, window_bounds = array<i64: 16, 32>}, {pipeline_mode = #tpu.pipeline_mode<synchronous>, transform_indices = @transform_2, window_bounds = array<i64: 32, 16>}, {pipeline_mode = #tpu.pipeline_mode<synchronous>, transform_indices = @transform_3, window_bounds = array<i64: 19, 32>}, {transform_indices = @transform_4, window_bounds = array<i64: 8, 1>}]} {
    %c0 = arith.constant 0 : index
    %c0_0 = arith.constant 0 : index
    %0 = vector.load %arg4[%c0, %c0_0] : memref<19x32xf32, #tpu.memory_space<vmem>>, vector<1x32xf32>
    %c1 = arith.constant 1 : index
    %c0_1 = arith.constant 0 : index
    %1 = vector.load %arg4[%c1, %c0_1] : memref<19x32xf32, #tpu.memory_space<vmem>>, vector<1x16xf32>
    %c2 = arith.constant 2 : index
    %c0_2 = arith.constant 0 : index
    %2 = vector.load %arg4[%c2, %c0_2] : memref<19x32xf32, #tpu.memory_space<vmem>>, vector<1x1xf32>
    %c3 = arith.constant 3 : index
    %c0_3 = arith.constant 0 : index
    %3 = vector.load %arg4[%c3, %c0_3] : memref<19x32xf32, #tpu.memory_space<vmem>>, vector<16x1xf32>
    %c0_4 = arith.constant 0 : index
    %c0_5 = arith.constant 0 : index
    %4 = vector.load %arg1[%c0_4, %c0_5] : memref<8x16xf32, #tpu.memory_space<vmem>>, vector<8x16xf32>
    %5 = arith.truncf %4 : vector<8x16xf32> to vector<8x16xbf16>
    %c0_6 = arith.constant 0 : index
    %c0_7 = arith.constant 0 : index
    %6 = vector.load %arg2[%c0_6, %c0_7] : memref<16x32xbf16, #tpu.memory_space<vmem>>, vector<16x32xbf16>
    %cst = arith.constant dense<0.000000e+00> : vector<8x32xf32>
    %7 = tpu.matmul %5, %6, %cst {dimension_numbers = #tpu.dot_dimension_numbers<[1], [0], [0], [1], [0, 0, 1, 1], [], []>} : vector<8x16xbf16>, vector<16x32xbf16>, vector<8x32xf32> -> vector<8x32xf32>
    %8 = vector.broadcast %0 : vector<1x32xf32> to vector<8x32xf32>
    %9 = arith.addf %7, %8 : vector<8x32xf32>
    %cst_8 = arith.constant 0.000000e+00 : f32
    %10 = vector.broadcast %cst_8 : f32 to vector<8x32xf32>
    %11 = arith.maximumf %9, %10 : vector<8x32xf32>
    %12 = arith.truncf %11 : vector<8x32xf32> to vector<8x32xbf16>
    %c0_9 = arith.constant 0 : index
    %c0_10 = arith.constant 0 : index
    %13 = vector.load %arg3[%c0_9, %c0_10] : memref<32x16xbf16, #tpu.memory_space<vmem>>, vector<32x16xbf16>
    %cst_11 = arith.constant dense<0.000000e+00> : vector<8x16xf32>
    %14 = tpu.matmul %12, %13, %cst_11 {dimension_numbers = #tpu.dot_dimension_numbers<[1], [0], [0], [1], [0, 0, 1, 1], [], []>} : vector<8x32xbf16>, vector<32x16xbf16>, vector<8x16xf32> -> vector<8x16xf32>
    %15 = vector.broadcast %1 : vector<1x16xf32> to vector<8x16xf32>
    %16 = arith.addf %14, %15 : vector<8x16xf32>
    %cst_12 = arith.constant 0.000000e+00 : f32
    %17 = vector.broadcast %cst_12 : f32 to vector<8x16xf32>
    %18 = arith.maximumf %16, %17 : vector<8x16xf32>
    %19 = arith.truncf %18 : vector<8x16xf32> to vector<8x16xbf16>
    %20 = arith.truncf %3 : vector<16x1xf32> to vector<16x1xbf16>
    %cst_13 = arith.constant dense<0.000000e+00> : vector<8x1xf32>
    %21 = tpu.matmul %19, %20, %cst_13 {dimension_numbers = #tpu.dot_dimension_numbers<[1], [0], [0], [1], [0, 0, 1, 1], [], []>} : vector<8x16xbf16>, vector<16x1xbf16>, vector<8x1xf32> -> vector<8x1xf32>
    %22 = vector.broadcast %2 : vector<1x1xf32> to vector<8x1xf32>
    %23 = arith.addf %21, %22 : vector<8x1xf32>
    %c0_14 = arith.constant 0 : index
    %c0_15 = arith.constant 0 : index
    %24 = vector.load %arg5[%c0_14, %c0_15] : memref<8x1xf32, #tpu.memory_space<vmem>>, vector<8x1xf32>
    tpu.vector_store %arg5[%c0_14, %c0_15], %23 {strides = array<i32>} : memref<8x1xf32, #tpu.memory_space<vmem>>, vector<8x1xf32>,
    return
  }
  func.func @transform_0(%arg0: i32) -> (i32, i32) {
    %c0_i32 = arith.constant 0 : i32
    %c0_i32_0 = arith.constant 0 : i32
    return %arg0, %c0_i32 : i32, i32
  }
  func.func @transform_1(%arg0: i32) -> (i32, i32) {
    %c0_i32 = arith.constant 0 : i32
    %c0_i32_0 = arith.constant 0 : i32
    %c0_i32_1 = arith.constant 0 : i32
    return %c0_i32, %c0_i32_0 : i32, i32
  }
  func.func @transform_2(%arg0: i32) -> (i32, i32) {
    %c0_i32 = arith.constant 0 : i32
    %c0_i32_0 = arith.constant 0 : i32
    %c0_i32_1 = arith.constant 0 : i32
    return %c0_i32, %c0_i32_0 : i32, i32
  }
  func.func @transform_3(%arg0: i32) -> (i32, i32) {
    %c0_i32 = arith.constant 0 : i32
    %c0_i32_0 = arith.constant 0 : i32
    %c0_i32_1 = arith.constant 0 : i32
    return %c0_i32, %c0_i32_0 : i32, i32
  }
  func.func @transform_4(%arg0: i32) -> (i32, i32) {
    %c0_i32 = arith.constant 0 : i32
    %c0_i32_0 = arith.constant 0 : i32
    return %arg0, %c0_i32 : i32, i32
  }
}

</mosaic_0001>

<bundles_post_ra>
// kernel: nn2_forward.1
= control target key start
LH: loop header
LB: loop body
LE: loop exit
PB: predicated region body
PF: predicated region fallthrough
CT: control target
= control target key end

     0   :  { %vm34_vm0 = vcmask 130048   ;;  %vm70_vm1 = vcmask 261120   ;;  %vm107_vm2 = vcmask 7168   ;;  %s191_s1 = inlined_call_operand.vmem [shape: bf16[16,32], index: 1, kind: input, shape index: {}]   ;;  %s192_s0 = inlined_call_operand.vmem [shape: f32[8,16], index: 0, kind: input, shape index: {}]   ;;  %s193_s3 = inlined_call_operand.vmem [shape: f32[19,32], index: 3, kind: input, shape index: {}]   ;;  %s194_s2 = inlined_call_operand.vmem [shape: bf16[32,16], index: 2, kind: input, shape index: {}]   ;;  %s195_s4 = inlined_call_operand.vmem [shape: f32[8,1], index: 4, kind: output, shape index: {}]  }
   0x1   :  { %v128_v0 = vld [vmem:[%s191_s1] sm:$0xff]  ;;  %v130_v3 = vld [vmem:[%s194_s2 + $0x8] sm:$0xff] }
   0x2   :  { %v23_v1 = vld [vmem:[%s192_s0] sm:$0xff]  ;;  %45 = vmatpush.bf16.msra.mxu0 %v128_v0  ;;  %80 = vmatpush.bf16.msra.mxu1 %v130_v3  ;;  %v22_v12 = vld [vmem:[%s193_s3 + $0xb] sm:$0xff] }
   0x3   :  { %v24_v2 = vpack.c.bf16 %v23_v1, %v23_v1  ;;  %v129_v4 = vld [vmem:[%s194_s2] sm:$0xff] }
   0x4   :  { %v131_v5 = vld [vmem:[%s193_s3] ss:$0 sm:$0xff]  ;;  %v21_v11 = vld [vmem:[%s193_s3 + $0x3] sm:$0xff]  ;;  %v132_v14 = vld [vmem:[%s193_s3 + $0x1] ss:$0 sm:$0xff] }
   0x5   :  { %117 = vmatmul.msk.bf16.vlgmr.msra.gmra.mxu0 %vm34_vm0, %v24_v2  ;;  %v89_v13 = vpack.c.bf16 %v22_v12, %v21_v11  ;;  %v133_v20 = vld [vmem:[%s193_s3 + $0x2] ss:$0 sm:$0xff] }
   0x6   :  { %81 = vmatpush.bf16.msra.mxu1 %v129_v4 }
   0x7   :  { %101 = vmatpush.bf16.msra.mxu2 %v89_v13 }
  0x82   :  { %v47_v6 = vpop.f32.mrf.mxu0 }
  0x83   :  { %v48_v7 = vadd.f32 %v131_v5, %v47_v6 }
  0x85   :  { %v51_v8 = vmax.f32 %v48_v7, 0.0 }
  0x87   :  { %v52_v9 = vpack.c.bf16 %v51_v8, %v51_v8 }
  0x89   :  { %126 = vmatmul.msk.bf16.vlgmr.msra.gmra.mxu1 %vm70_vm1, %v52_v9 }
  0x8a   :  { %v49_v10 = vpop.f32.mrf.mxu0 }
 0x106   :  { %v83_v15 = vpop.f32.mrf.mxu1 }
 0x107   :  { %v84_v16 = vadd.f32 %v132_v14, %v83_v15 }
 0x109   :  { %v87_v17 = vmax.f32 %v84_v16, 0.0 }
 0x10b   :  { %v88_v18 = vpack.c.bf16 %v87_v17, %v87_v17 }
 0x10d   :  { %127 = vmatmul.msk.bf16.vlgmr.msra.gmra.mxu2 %vm34_vm0, %v88_v18 }
 0x10e   :  { %v85_v19 = vpop.f32.mrf.mxu1 }
 0x190   :  { %v103_v21 = vpop.f32.mrf.mxu2 }
 0x191   :  { %v104_v22 = vadd.f32 %v133_v20, %v103_v21 }
 0x193   :  { %108 = vst.msk [vmem:[%s195_s4] sm:$0xff] %vm107_vm2, %v104_v22 }
 0x198   :  { %v105_v23 = vpop.f32.mrf.mxu2 }

</bundles_post_ra>
